<compile_context>
chip_gen: v6e
topology: v6e:2x2x1
jax: 0.10.0
libtpu: 0.0.40
codegen_flags: <defaults>
</compile_context>

<pallas_src>
import jax
import jax.numpy as jnp
from jax import lax
from jax.experimental import pallas as pl
from jax.experimental.pallas import tpu as pltpu

# ---------------- hyper-parameters (small, consistent with the module) -------
N_NODES = 16          # number of graph nodes
NUM_FEATURES = 32     # input feature dim
MIDDLE_SIZE = 16      # hidden dim of GATE layer 1
REPR_SIZE = 8         # embedding (representation) dim of GATE layer 2
N_CLUSTERS = 4        # clusters_number
ALPHA = 0.2           # leaky-relu negative slope
V = 1.0               # student-t degrees of freedom

P_EXP = (V + 1.0) / 2.0
TOTAL_EXP = P_EXP * P_EXP      # the reference module applies the power twice

# ---------------- single packed input slab (lane-dense, 128 cols) ------------
SLAB_COLS = 128
# rows 0:16
COL_X = 0                                    # x      : cols 0:32
COL_ADJ = COL_X + NUM_FEATURES               # adj    : cols 32:48
COL_M = COL_ADJ + N_NODES                    # M      : cols 48:64
COL_W2P = COL_M + N_NODES                    # W2p    : cols 64:74 (rows 0:16)
COL_CLU = 80                                 # clu^T  : cols 80:84 (rows 0:8)
# rows 16:48
ROW_W1P = N_NODES                            # W1p    : rows 16:48, cols 0:18
SLAB_ROWS = ROW_W1P + NUM_FEATURES           # 48

# ---------------- single lane-dense output slab -------------------------------
OUT_WIDTH = 128
COL_APRED = 0                                # A_pred : cols 0:16
COL_Z = COL_APRED + N_NODES                  # z      : cols 16:24
COL_Q = COL_Z + REPR_SIZE                    # q      : cols 24:28
OUT_PAD = OUT_WIDTH - (N_NODES + REPR_SIZE + N_CLUSTERS)


def _elu(x):
    # F.elu with alpha=1.0
    return jnp.where(x > 0, x, jnp.exp(x) - 1.0)


# --------------------------------- kernel ------------------------------------
def cdbne_kernel(slab_ref, out_ref):
    s = slab_ref[...]                                        # (48, 128)

    x = s[0:N_NODES, COL_X:COL_X + NUM_FEATURES]             # (N, F)
    adj = s[0:N_NODES, COL_ADJ:COL_ADJ + N_NODES]            # (N, N)
    M = s[0:N_NODES, COL_M:COL_M + N_NODES]                  # (N, N)
    w2p = s[0:MIDDLE_SIZE, COL_W2P:COL_W2P + REPR_SIZE + 2]  # (MID, REPR+2)
    clu_t = s[0:REPR_SIZE, COL_CLU:COL_CLU + N_CLUSTERS]     # (REPR, K)
    w1p = s[ROW_W1P:ROW_W1P + NUM_FEATURES, 0:MIDDLE_SIZE + 2]  # (F, MID+2)

    def gat_layer(inp, wp, dim):
        # One MXU push: [h | h a_self | h a_neigh]
        hs = jnp.dot(inp, wp, preferred_element_type=jnp.float32)    # (N, dim+2)
        h = hs[:, 0:dim]                                             # (N, dim)
        attn_self = hs[:, dim:dim + 1]                               # (N, 1)
        attn_neigh = hs[:, dim + 1:dim + 2]                          # (N, 1)
        attn_dense = (attn_self + attn_neigh.T) * M                  # (N, N)
        # leaky relu (negative slope ALPHA)
        attn_dense = jnp.where(attn_dense > 0, attn_dense, ALPHA * attn_dense)
        # mask non-edges (scalar fill; no materialized constant), row softmax
        e = jnp.where(adj > 0, attn_dense, -9e15)
        e = e - jnp.max(e, axis=1, keepdims=True)
        pe = jnp.exp(e)
        attention = pe * pl.reciprocal(jnp.sum(pe, axis=1, keepdims=True),
                                       approx=True)
        h_prime = jnp.dot(attention, h, preferred_element_type=jnp.float32)
        return _elu(h_prime)                                         # concat=True -> ELU

    h1 = gat_layer(x, w1p, MIDDLE_SIZE)                              # (N, MID)
    h2 = gat_layer(h1, w2p, REPR_SIZE)                               # (N, REPR)

    # F.normalize(h2, p=2, dim=1)  -> single EUP rsqrt, no approx-rcp error on z
    sumsq = jnp.sum(h2 * h2, axis=1, keepdims=True)
    z = h2 * lax.rsqrt(jnp.maximum(sumsq, 1e-24))

    # A_pred = sigmoid(z z^T) via tanh (one transcendental, no approx rcp)
    logits = lax.dot_general(z, z, (((1,), (1,)), ((), ())),
                             preferred_element_type=jnp.float32)     # (N, N)
    a_pred = 0.5 * jnp.tanh(0.5 * logits) + 0.5

    # student-t / modularity soft assignment; ||z_i - mu_k||^2 via gram trick
    z2 = jnp.sum(z * z, axis=1, keepdims=True)                       # (N, 1)
    c2 = jnp.sum(clu_t * clu_t, axis=0, keepdims=True)               # (1, K)
    zc = jnp.dot(z, clu_t, preferred_element_type=jnp.float32)       # (N, K)
    dist = z2 + c2 - 2.0 * zc

    base = 1.0 + dist / V
    if TOTAL_EXP == 1.0:
        # v == 1: the module's ((1+dist/v)^-p)^p collapses to a reciprocal
        q_un = pl.reciprocal(base, approx=True)
    else:
        # general case — single fused power, matching the module's double pow
        q_un = jnp.exp(-TOTAL_EXP * jnp.log(base))
    # exact divide for the final normalization (q may feed KL targets)
    q = q_un / jnp.sum(q_un, axis=1, keepdims=True)

    # assemble the output slab in registers -> ONE unmasked full-width store
    pad = jnp.zeros((N_NODES, OUT_PAD), jnp.float32)
    out_ref[...] = jnp.concatenate([a_pred, z, q, pad], axis=-1)


# ------------------------------ host-side packing ----------------------------
def pack_slab(x, adj, M, params):
    w1 = params["W1"]
    w1p = jnp.concatenate(
        [w1, w1 @ params["a_self1"], w1 @ params["a_neigh1"]], axis=1)  # (F, MID+2)
    w2 = params["W2"]
    w2p = jnp.concatenate(
        [w2, w2 @ params["a_self2"], w2 @ params["a_neigh2"]], axis=1)  # (MID, REPR+2)
    clu_t = params["cluster_layer"].T                                   # (REPR, K)

    slab = jnp.zeros((SLAB_ROWS, SLAB_COLS), jnp.float32)
    slab = slab.at[0:N_NODES, COL_X:COL_X + NUM_FEATURES].set(x)
    slab = slab.at[0:N_NODES, COL_ADJ:COL_ADJ + N_NODES].set(adj)
    slab = slab.at[0:N_NODES, COL_M:COL_M + N_NODES].set(M)
    slab = slab.at[0:MIDDLE_SIZE, COL_W2P:COL_W2P + REPR_SIZE + 2].set(w2p)
    slab = slab.at[0:REPR_SIZE, COL_CLU:COL_CLU + N_CLUSTERS].set(clu_t)
    slab = slab.at[ROW_W1P:ROW_W1P + NUM_FEATURES, 0:MIDDLE_SIZE + 2].set(w1p)
    return slab


@jax.jit
def cdbne_forward(x, adj, M, params):
    slab = pack_slab(x, adj, M, params)
    vmem = pl.BlockSpec(memory_space=pltpu.MemorySpace.VMEM)
    flops = 2 * (N_NODES * NUM_FEATURES * (MIDDLE_SIZE + 2)
                 + N_NODES * N_NODES * MIDDLE_SIZE
                 + N_NODES * MIDDLE_SIZE * (REPR_SIZE + 2)
                 + N_NODES * N_NODES * REPR_SIZE
                 + N_NODES * REPR_SIZE * N_NODES
                 + N_NODES * REPR_SIZE * N_CLUSTERS)
    cost = pl.CostEstimate(
        flops=flops,
        transcendentals=N_NODES * (3 * N_NODES + N_CLUSTERS + 2),
        bytes_accessed=4 * (SLAB_ROWS * SLAB_COLS + N_NODES * OUT_WIDTH))
    out = pl.pallas_call(
        cdbne_kernel,
        out_shape=jax.ShapeDtypeStruct((N_NODES, OUT_WIDTH), jnp.float32),
        in_specs=[vmem],
        out_specs=vmem,
        cost_estimate=cost,
    )(slab)
    a_pred = out[:, COL_APRED:COL_APRED + N_NODES]
    z = out[:, COL_Z:COL_Z + REPR_SIZE]
    q = out[:, COL_Q:COL_Q + N_CLUSTERS]
    return a_pred, z, q


# --------------------------- pure-JAX reference ------------------------------
def cdbne_reference(x, adj, M, params):
    def layer(inp, W, a_s, a_n):
        h = inp @ W
        attn = (h @ a_s) + (h @ a_n).T
        attn = attn * M
        attn = jnp.where(attn > 0, attn, ALPHA * attn)
        e = jnp.where(adj > 0, attn, -9e15)
        att = jax.nn.softmax(e, axis=1)
        return jax.nn.elu(att @ h)

    h1 = layer(x, params["W1"], params["a_self1"], params["a_neigh1"])
    h2 = layer(h1, params["W2"], params["a_self2"], params["a_neigh2"])
    nrm = jnp.sqrt(jnp.sum(h2 * h2, axis=1, keepdims=True))
    z = h2 / jnp.maximum(nrm, 1e-12)
    a_pred = jax.nn.sigmoid(z @ z.T)
    clu = params["cluster_layer"]
    dist = jnp.sum((z[:, None, :] - clu[None, :, :]) ** 2, axis=2)
    q = 1.0 / (1.0 + dist / V) ** P_EXP
    q = q ** P_EXP
    q = q / jnp.sum(q, axis=1, keepdims=True)
    return a_pred, z, q


# --------------------------- parameter init ----------------------------------
def xavier_uniform(key, shape, gain=1.414):
    fan_in, fan_out = shape[0], shape[1]
    a = gain * jnp.sqrt(6.0 / (fan_in + fan_out))
    return jax.random.uniform(key, shape, jnp.float32, -a, a)


def xavier_normal(key, shape, gain=1.0):
    fan_in, fan_out = shape[0], shape[1]
    std = gain * jnp.sqrt(2.0 / (fan_in + fan_out))
    return std * jax.random.normal(key, shape, jnp.float32)


def init_params(key):
    ks = jax.random.split(key, 7)
    return {
        "W1": xavier_uniform(ks[0], (NUM_FEATURES, MIDDLE_SIZE)),
        "a_self1": xavier_uniform(ks[1], (MIDDLE_SIZE, 1)),
        "a_neigh1": xavier_uniform(ks[2], (MIDDLE_SIZE, 1)),
        "W2": xavier_uniform(ks[3], (MIDDLE_SIZE, REPR_SIZE)),
        "a_self2": xavier_uniform(ks[4], (REPR_SIZE, 1)),
        "a_neigh2": xavier_uniform(ks[5], (REPR_SIZE, 1)),
        "cluster_layer": xavier_normal(ks[6], (N_CLUSTERS, REPR_SIZE)),
    }


if __name__ == "__main__":
    key = jax.random.PRNGKey(0)
    k_x, k_adj, k_p = jax.random.split(key, 3)

    # deterministic synthetic graph
    x = jax.random.normal(k_x, (N_NODES, NUM_FEATURES), jnp.float32)
    a = (jax.random.uniform(k_adj, (N_NODES, N_NODES)) > 0.7).astype(jnp.float32)
    adj = jnp.clip(a + a.T, 0.0, 1.0)
    adj = jnp.clip(adj + jnp.eye(N_NODES, dtype=jnp.float32), 0.0, 1.0)

    # M: t-order (t=2) transition/proximity matrix (plain-JAX glue, like get_M)
    deg = jnp.sum(adj, axis=1, keepdims=True)
    tran = adj / deg
    M = (tran + tran @ tran) / 2.0

    params = init_params(k_p)

    a_pred, z_emb, q = cdbne_forward(x, adj, M, params)
    jax.block_until_ready((a_pred, z_emb, q))

    assert a_pred.shape == (N_NODES, N_NODES)
    assert z_emb.shape == (N_NODES, REPR_SIZE)
    assert q.shape == (N_NODES, N_CLUSTERS)
    assert bool(jnp.all(jnp.isfinite(a_pred)))
    assert bool(jnp.all(jnp.isfinite(z_emb)))
    assert bool(jnp.all(jnp.isfinite(q)))

    # correctness vs pure-JAX reference (loose tolerance: EUP approx reciprocal
    # in the softmax denominators)
    ra, rz, rq = cdbne_reference(x, adj, M, params)
    assert float(jnp.max(jnp.abs(a_pred - ra))) < 5e-2
    assert float(jnp.max(jnp.abs(z_emb - rz))) < 5e-2
    assert float(jnp.max(jnp.abs(q - rq))) < 5e-2

    print("KERNEL_OK")
</pallas_src>

<mosaic_0001>
module attributes {stable_mosaic.version = 11 : i64} {
  func.func @cdbne_kernel(%arg0: memref<48x128xf32, #tpu.memory_space<vmem>>, %arg1: memref<16x128xf32, #tpu.memory_space<vmem>>) attributes {dimension_semantics = [], scalar_prefetch = 0 : i64, scratch_operands = 0 : i64, tpu.core_type = #tpu.core_type<tc>} {
    %c0 = arith.constant 0 : index
    %c0_0 = arith.constant 0 : index
    %0 = vector.load %arg0[%c0, %c0_0] : memref<48x128xf32, #tpu.memory_space<vmem>>, vector<48x128xf32>
    %1 = vector.extract_strided_slice %0 {offsets = [0, 0], sizes = [16, 32], strides = [1, 1]} : vector<48x128xf32> to vector<16x32xf32>
    %2 = vector.extract_strided_slice %0 {offsets = [0, 32], sizes = [16, 16], strides = [1, 1]} : vector<48x128xf32> to vector<16x16xf32>
    %3 = vector.extract_strided_slice %0 {offsets = [0, 48], sizes = [16, 16], strides = [1, 1]} : vector<48x128xf32> to vector<16x16xf32>
    %4 = vector.extract_strided_slice %0 {offsets = [0, 64], sizes = [16, 10], strides = [1, 1]} : vector<48x128xf32> to vector<16x10xf32>
    %5 = vector.extract_strided_slice %0 {offsets = [0, 80], sizes = [8, 4], strides = [1, 1]} : vector<48x128xf32> to vector<8x4xf32>
    %6 = vector.extract_strided_slice %0 {offsets = [16, 0], sizes = [32, 18], strides = [1, 1]} : vector<48x128xf32> to vector<32x18xf32>
    %cst = arith.constant dense<0.000000e+00> : vector<16x18xf32>
    %7 = tpu.matmul %1, %6, %cst {dimension_numbers = #tpu.dot_dimension_numbers<[1], [0], [0], [1], [0, 0, 1, 1], [], []>} : vector<16x32xf32>, vector<32x18xf32>, vector<16x18xf32> -> vector<16x18xf32>
    %8 = vector.extract_strided_slice %7 {offsets = [0, 0], sizes = [16, 16], strides = [1, 1]} : vector<16x18xf32> to vector<16x16xf32>
    %9 = vector.extract_strided_slice %7 {offsets = [0, 16], sizes = [16, 1], strides = [1, 1]} : vector<16x18xf32> to vector<16x1xf32>
    %10 = vector.extract_strided_slice %7 {offsets = [0, 17], sizes = [16, 1], strides = [1, 1]} : vector<16x18xf32> to vector<16x1xf32>
    %11 = tpu.transpose %10, [1, 0] : vector<16x1xf32> -> vector<1x16xf32>
    %12 = vector.broadcast %9 : vector<16x1xf32> to vector<16x16xf32>
    %13 = vector.broadcast %11 : vector<1x16xf32> to vector<16x16xf32>
    %14 = arith.addf %12, %13 : vector<16x16xf32>
    %15 = arith.mulf %14, %3 : vector<16x16xf32>
    %cst_1 = arith.constant 0.000000e+00 : f32
    %16 = vector.broadcast %cst_1 : f32 to vector<16x16xf32>
    %17 = arith.cmpf ogt, %15, %16 : vector<16x16xf32>
    %cst_2 = arith.constant 2.000000e-01 : f32
    %18 = vector.broadcast %cst_2 : f32 to vector<16x16xf32>
    %19 = arith.mulf %18, %15 : vector<16x16xf32>
    %20 = arith.select %17, %15, %19 : vector<16x16xi1>, vector<16x16xf32>
    %cst_3 = arith.constant 0.000000e+00 : f32
    %21 = vector.broadcast %cst_3 : f32 to vector<16x16xf32>
    %22 = arith.cmpf ogt, %2, %21 : vector<16x16xf32>
    %cst_4 = arith.constant -9.000000e+15 : f32
    %23 = vector.broadcast %cst_4 : f32 to vector<16x16xf32>
    %24 = arith.select %22, %20, %23 : vector<16x16xi1>, vector<16x16xf32>
    %cst_5 = arith.constant dense<0xFF800000> : vector<16xf32>
    %25 = vector.multi_reduction <maximumf>, %24, %cst_5 [1] : vector<16x16xf32> to vector<16xf32>
    %26 = vector.shape_cast %25 : vector<16xf32> to vector<16x1xf32>
    %27 = vector.broadcast %26 : vector<16x1xf32> to vector<16x16xf32>
    %28 = arith.subf %24, %27 : vector<16x16xf32>
    %29 = math.exp %28 : vector<16x16xf32>
    %cst_6 = arith.constant dense<0.000000e+00> : vector<16xf32>
    %30 = vector.multi_reduction <add>, %29, %cst_6 [1] : vector<16x16xf32> to vector<16xf32>
    %31 = vector.shape_cast %30 : vector<16xf32> to vector<16x1xf32>
    %32 = tpu.reciprocal %31 {approx = true} : vector<16x1xf32> -> vector<16x1xf32>
    %33 = vector.broadcast %32 : vector<16x1xf32> to vector<16x16xf32>
    %34 = arith.mulf %29, %33 : vector<16x16xf32>
    %cst_7 = arith.constant dense<0.000000e+00> : vector<16x16xf32>
    %35 = tpu.matmul %34, %8, %cst_7 {dimension_numbers = #tpu.dot_dimension_numbers<[1], [0], [0], [1], [0, 0, 1, 1], [], []>} : vector<16x16xf32>, vector<16x16xf32>, vector<16x16xf32> -> vector<16x16xf32>
    %cst_8 = arith.constant 0.000000e+00 : f32
    %36 = vector.broadcast %cst_8 : f32 to vector<16x16xf32>
    %37 = arith.cmpf ogt, %35, %36 : vector<16x16xf32>
    %38 = math.exp %35 : vector<16x16xf32>
    %cst_9 = arith.constant 1.000000e+00 : f32
    %39 = vector.broadcast %cst_9 : f32 to vector<16x16xf32>
    %40 = arith.subf %38, %39 : vector<16x16xf32>
    %41 = arith.select %37, %35, %40 : vector<16x16xi1>, vector<16x16xf32>
    %cst_10 = arith.constant dense<0.000000e+00> : vector<16x10xf32>
    %42 = tpu.matmul %41, %4, %cst_10 {dimension_numbers = #tpu.dot_dimension_numbers<[1], [0], [0], [1], [0, 0, 1, 1], [], []>} : vector<16x16xf32>, vector<16x10xf32>, vector<16x10xf32> -> vector<16x10xf32>
    %43 = vector.extract_strided_slice %42 {offsets = [0, 0], sizes = [16, 8], strides = [1, 1]} : vector<16x10xf32> to vector<16x8xf32>
    %44 = vector.extract_strided_slice %42 {offsets = [0, 8], sizes = [16, 1], strides = [1, 1]} : vector<16x10xf32> to vector<16x1xf32>
    %45 = vector.extract_strided_slice %42 {offsets = [0, 9], sizes = [16, 1], strides = [1, 1]} : vector<16x10xf32> to vector<16x1xf32>
    %46 = tpu.transpose %45, [1, 0] : vector<16x1xf32> -> vector<1x16xf32>
    %47 = vector.broadcast %44 : vector<16x1xf32> to vector<16x16xf32>
    %48 = vector.broadcast %46 : vector<1x16xf32> to vector<16x16xf32>
    %49 = arith.addf %47, %48 : vector<16x16xf32>
    %50 = arith.mulf %49, %3 : vector<16x16xf32>
    %cst_11 = arith.constant 0.000000e+00 : f32
    %51 = vector.broadcast %cst_11 : f32 to vector<16x16xf32>
    %52 = arith.cmpf ogt, %50, %51 : vector<16x16xf32>
    %cst_12 = arith.constant 2.000000e-01 : f32
    %53 = vector.broadcast %cst_12 : f32 to vector<16x16xf32>
    %54 = arith.mulf %53, %50 : vector<16x16xf32>
    %55 = arith.select %52, %50, %54 : vector<16x16xi1>, vector<16x16xf32>
    %cst_13 = arith.constant 0.000000e+00 : f32
    %56 = vector.broadcast %cst_13 : f32 to vector<16x16xf32>
    %57 = arith.cmpf ogt, %2, %56 : vector<16x16xf32>
    %cst_14 = arith.constant -9.000000e+15 : f32
    %58 = vector.broadcast %cst_14 : f32 to vector<16x16xf32>
    %59 = arith.select %57, %55, %58 : vector<16x16xi1>, vector<16x16xf32>
    %cst_15 = arith.constant dense<0xFF800000> : vector<16xf32>
    %60 = vector.multi_reduction <maximumf>, %59, %cst_15 [1] : vector<16x16xf32> to vector<16xf32>
    %61 = vector.shape_cast %60 : vector<16xf32> to vector<16x1xf32>
    %62 = vector.broadcast %61 : vector<16x1xf32> to vector<16x16xf32>
    %63 = arith.subf %59, %62 : vector<16x16xf32>
    %64 = math.exp %63 : vector<16x16xf32>
    %cst_16 = arith.constant dense<0.000000e+00> : vector<16xf32>
    %65 = vector.multi_reduction <add>, %64, %cst_16 [1] : vector<16x16xf32> to vector<16xf32>
    %66 = vector.shape_cast %65 : vector<16xf32> to vector<16x1xf32>
    %67 = tpu.reciprocal %66 {approx = true} : vector<16x1xf32> -> vector<16x1xf32>
    %68 = vector.broadcast %67 : vector<16x1xf32> to vector<16x16xf32>
    %69 = arith.mulf %64, %68 : vector<16x16xf32>
    %cst_17 = arith.constant dense<0.000000e+00> : vector<16x8xf32>
    %70 = tpu.matmul %69, %43, %cst_17 {dimension_numbers = #tpu.dot_dimension_numbers<[1], [0], [0], [1], [0, 0, 1, 1], [], []>} : vector<16x16xf32>, vector<16x8xf32>, vector<16x8xf32> -> vector<16x8xf32>
    %cst_18 = arith.constant 0.000000e+00 : f32
    %71 = vector.broadcast %cst_18 : f32 to vector<16x8xf32>
    %72 = arith.cmpf ogt, %70, %71 : vector<16x8xf32>
    %73 = math.exp %70 : vector<16x8xf32>
    %cst_19 = arith.constant 1.000000e+00 : f32
    %74 = vector.broadcast %cst_19 : f32 to vector<16x8xf32>
    %75 = arith.subf %73, %74 : vector<16x8xf32>
    %76 = arith.select %72, %70, %75 : vector<16x8xi1>, vector<16x8xf32>
    %77 = arith.mulf %76, %76 : vector<16x8xf32>
    %cst_20 = arith.constant dense<0.000000e+00> : vector<16xf32>
    %78 = vector.multi_reduction <add>, %77, %cst_20 [1] : vector<16x8xf32> to vector<16xf32>
    %79 = vector.shape_cast %78 : vector<16xf32> to vector<16x1xf32>
    %cst_21 = arith.constant 1.000000e-24 : f32
    %80 = vector.broadcast %cst_21 : f32 to vector<16x1xf32>
    %81 = arith.maximumf %79, %80 : vector<16x1xf32>
    %82 = math.rsqrt %81 : vector<16x1xf32>
    %83 = vector.broadcast %82 : vector<16x1xf32> to vector<16x8xf32>
    %84 = arith.mulf %76, %83 : vector<16x8xf32>
    %cst_22 = arith.constant dense<0.000000e+00> : vector<16x16xf32>
    %85 = tpu.matmul %84, %84, %cst_22 {dimension_numbers = #tpu.dot_dimension_numbers<[1], [1], [0], [0], [0, 0, 1, 0], [], []>} : vector<16x8xf32>, vector<16x8xf32>, vector<16x16xf32> -> vector<16x16xf32>
    %cst_23 = arith.constant 5.000000e-01 : f32
    %86 = vector.broadcast %cst_23 : f32 to vector<16x16xf32>
    %87 = arith.mulf %86, %85 : vector<16x16xf32>
    %88 = math.tanh %87 : vector<16x16xf32>
    %cst_24 = arith.constant 5.000000e-01 : f32
    %89 = vector.broadcast %cst_24 : f32 to vector<16x16xf32>
    %90 = arith.mulf %89, %88 : vector<16x16xf32>
    %cst_25 = arith.constant 5.000000e-01 : f32
    %91 = vector.broadcast %cst_25 : f32 to vector<16x16xf32>
    %92 = arith.addf %90, %91 : vector<16x16xf32>
    %93 = arith.mulf %84, %84 : vector<16x8xf32>
    %cst_26 = arith.constant dense<0.000000e+00> : vector<16xf32>
    %94 = vector.multi_reduction <add>, %93, %cst_26 [1] : vector<16x8xf32> to vector<16xf32>
    %95 = vector.shape_cast %94 : vector<16xf32> to vector<16x1xf32>
    %96 = arith.mulf %5, %5 : vector<8x4xf32>
    %cst_27 = arith.constant dense<0.000000e+00> : vector<4xf32>
    %97 = vector.multi_reduction <add>, %96, %cst_27 [0] : vector<8x4xf32> to vector<4xf32>
    %98 = vector.shape_cast %97 : vector<4xf32> to vector<1x4xf32>
    %cst_28 = arith.constant dense<0.000000e+00> : vector<16x4xf32>
    %99 = tpu.matmul %84, %5, %cst_28 {dimension_numbers = #tpu.dot_dimension_numbers<[1], [0], [0], [1], [0, 0, 1, 1], [], []>} : vector<16x8xf32>, vector<8x4xf32>, vector<16x4xf32> -> vector<16x4xf32>
    %100 = vector.broadcast %95 : vector<16x1xf32> to vector<16x4xf32>
    %101 = vector.broadcast %98 : vector<1x4xf32> to vector<16x4xf32>
    %102 = arith.addf %100, %101 : vector<16x4xf32>
    %cst_29 = arith.constant 2.000000e+00 : f32
    %103 = vector.broadcast %cst_29 : f32 to vector<16x4xf32>
    %104 = arith.mulf %103, %99 : vector<16x4xf32>
    %105 = arith.subf %102, %104 : vector<16x4xf32>
    %cst_30 = arith.constant 1.000000e+00 : f32
    %106 = vector.broadcast %cst_30 : f32 to vector<16x4xf32>
    %107 = arith.divf %105, %106 : vector<16x4xf32>
    %cst_31 = arith.constant 1.000000e+00 : f32
    %108 = vector.broadcast %cst_31 : f32 to vector<16x4xf32>
    %109 = arith.addf %108, %107 : vector<16x4xf32>
    %110 = tpu.reciprocal %109 {approx = true} : vector<16x4xf32> -> vector<16x4xf32>
    %cst_32 = arith.constant dense<0.000000e+00> : vector<16xf32>
    %111 = vector.multi_reduction <add>, %110, %cst_32 [1] : vector<16x4xf32> to vector<16xf32>
    %112 = vector.shape_cast %111 : vector<16xf32> to vector<16x1xf32>
    %113 = vector.broadcast %112 : vector<16x1xf32> to vector<16x4xf32>
    %114 = arith.divf %110, %113 : vector<16x4xf32>
    %cst_33 = arith.constant 0.000000e+00 : f32
    %115 = vector.broadcast %cst_33 : f32 to vector<16x100xf32>
    %116 = tpu.concatenate %92, %84, %114, %115 in 1 : vector<16x16xf32>, vector<16x8xf32>, vector<16x4xf32>, vector<16x100xf32> -> vector<16x128xf32>
    %c0_34 = arith.constant 0 : index
    %c0_35 = arith.constant 0 : index
    %117 = vector.load %arg1[%c0_34, %c0_35] : memref<16x128xf32, #tpu.memory_space<vmem>>, vector<16x128xf32>
    tpu.vector_store %arg1[%c0_34, %c0_35], %116 {strides = array<i32>} : memref<16x128xf32, #tpu.memory_space<vmem>>, vector<16x128xf32>,
    return
  }
}

</mosaic_0001>

<bundles_post_ra>
// kernel: cdbne_forward.1
= control target key start
LH: loop header
LB: loop body
LE: loop exit
PB: predicated region body
PF: predicated region fallthrough
CT: control target
= control target key end

     0   :  { %vm14_vm0 = vcmask 261120   ;;  %v993_v6 = vmov 16   ;;  %s994_s18 = smov 111   ;;  %v144_v11 = vlaneseq  ;;  %s996_s19 = smov 32   ;;  %vm176_vm4 = vcmask 392448   ;;  %s1125_s0 = inlined_call_operand.vmem [shape: f32[48,128], index: 0, kind: input, shape index: {}]   ;;  %s1126_s1 = inlined_call_operand.vmem [shape: f32[16,128], index: 1, kind: output, shape index: {}]  }
   0x1   :  { %v13_v0 = vld [vmem:[%s1125_s0 + $0x28] sm:$0xff]  ;;  %v12_v1 = vld [vmem:[%s1125_s0 + $0x20] sm:$0xff]  ;;  %v11_v3 = vld [vmem:[%s1125_s0 + $0x18] sm:$0xff]  ;;  %950 = vset.pattern.permute.xlu1 %v993_v6  ;;  %s997_s20 = smov 96   ;;  %vm197_vm6 = vcmask 130048   ;;  %s998_s21 = smov 64  }
   0x2   :  { %894 = vmatprep.subr.mxu0 %v13_v0  ;;  %v1023_v2 = vld [vmem:[%s1125_s0] sm:$0xff]  ;;  %v10_v4 = vld [vmem:[%s1125_s0 + $0x10] sm:$0xff]  ;;  %v1036_v5 = vld [vmem:[%s1125_s0 + $0x8] sm:$0xff]  ;;  %s995_s0 = smov 80   ;;  %v1044_v13 = vshrl.u32 %v144_v11, 7  ;;  %s1000_s22 = smov 119  }
   0x3   :  { %895 = vmatpush3.msra.mxu0 %v13_v0  ;;  %902 = vmatprep.mubr.msk.f32.mxu0 %vm14_vm0, %v1023_v2  ;;  %vm164_vm3 = vcmp.gt.f32.partialorder %v1023_v2, 0.0  ;;  %vm165_vm5 = vcmp.gt.f32.partialorder %v1036_v5, 0.0  ;;  %vm589_vm12 = vcmask 64512   ;;  %s1001_s23 = smov 48   ;;  %vm700_vm14 = vcmask 687744   ;;  %s1002_s24 = smov 16  }
   0x4   :  { %896 = vmatprep.subr.mxu0 %v12_v1  ;;  %v146_v15 = vsub.s32 0, %v1044_v13  ;;  %vm812_vm15 = vcmask 31744   ;;  %s1003_s25 = smov 72  }
   0x5   :  { %897 = vmatpush3.msra.mxu0 %v12_v1 }
   0x6   :  { %898 = vmatprep.subr.mxu0 %v11_v3 }
   0x7   :  { %899 = vmatpush3.msra.mxu0 %v11_v3  ;;  %v999_v3 = vmov 8  }
   0x8   :  { %900 = vmatprep.subr.mxu0 %v10_v4 }
   0x9   :  { %901 = vmatpush3.msra.mxu0 %v10_v4 }
   0xa   :  { %903 = vmatmul.mubr.msk.f32.vlgmr.msra.gmra.mxu0 %vm14_vm0, %v1036_v5  ;;  %vm839_vm0 = vcmask 195584  }
  0xca   :  { %v904_v7 = vpop.f32.mrf.mxu0 }
  0xcb   :  { %905 = vmatprep.subr.mxu1 %v904_v7 }
  0xcc   :  { %v87_v8 = vpop.f32.mrf.mxu0  ;;  %906 = vmatpush3.msra.mxu1 %v904_v7 }
  0xcd   :  { %137 = vperm.xlu1 %950, %v87_v8   ;;  %98 = vrot.lane.b32.xlu0 %v87_v8, %s994_s18 }
  0xce   :  { %907 = vmatprep.subr.mxu1 %v87_v8 }
  0xcf   :  { %908 = vmatpush3.msra.mxu1 %v87_v8 }
  0xd1   :  { %141 = vperm.xlu1 %950, %v904_v7   ;;  %100 = vrot.lane.b32.xlu0 %v904_v7, %s994_s18 }
  0xd5   :  { %150 = vrot.lane.b32.xlu0 %v1023_v2, %s995_s0  ;;  %152 = vrot.lane.b32.xlu1 %v1036_v5, %s995_s0 }
  0xd6   :  { %952 = vset.pattern.permute.xlu1 %v999_v3 }
 0x13f   :  { %v99_v9 = vpop.permute.xlu0 %98 }
 0x140   :  { %104 = vxpose.xlu0.b32.start [1/2] (short) (narrow) %v99_v9, 8 }
 0x143   :  { %v101_v10 = vpop.permute.xlu0 %100 }
 0x144   :  { %105 = vxpose.xlu0.b32.end [2/2] (short) (narrow) %v101_v10, 8 }
 0x147   :  { %v1046_v14 = vpop.permute.xlu0 %150 }
 0x148   :  { %v138_v12 = vpop.permute.xlu1 %137 }
 0x14c   :  { %v142_v16 = vpop.permute.xlu1 %141 }
 0x150   :  { %v1051_v19 = vpop.permute.xlu1 %152 }
 0x16d   :  { %951 = vset.pattern.permute.xlu0 %v999_v3 }
 0x1bc   :  { %v120_v17 = vpop.trf.xlu0 }
 0x1bd   :  { %v147_v18 = vrot.slane %v120_v17, %v146_v15 }
 0x1bf   :  { %v148_v20 = vadd.f32 %v147_v18, %v138_v12  ;;  %v149_v21 = vadd.f32 %v147_v18, %v142_v16 }
 0x1c1   :  { %v156_v22 = vmul.f32 %v1046_v14, %v148_v20  ;;  %v157_v23 = vmul.f32 %v1051_v19, %v149_v21 }
 0x1c3   :  { %vm158_vm1 = vcmp.gt.f32.partialorder %v156_v22, 0.0  ;;  %v160_v24 = vmul.f32 0.2, %v156_v22  ;;  %v161_v26 = vmul.f32 0.2, %v157_v23  ;;  %vm159_vm2 = vcmp.gt.f32.partialorder %v157_v23, 0.0 }
 0x1c5   :  { %v162_v25 = vsel %vm158_vm1, %v156_v22, %v160_v24  ;;  %v163_v27 = vsel %vm159_vm2, %v157_v23, %v161_v26  ;;  %vm842_vm1 = vcmask 228352  }
 0x1c6   :  { %168 = vrot.lane.b32.xlu1 %v162_v25, %s996_s19 }
 0x1ca   :  { %170 = vrot.lane.b32.xlu1 %v163_v27, %s996_s19 }
 0x238   :  { %v169_v28 = vpop.permute.xlu1 %168 }
 0x239   :  { %v174_v29 = vsel %vm164_vm3, %v169_v28, -9e+15 }
 0x23a   :  { %v177_v30 = vsel %vm176_vm4, %v174_v29, -inf }
 0x23b   :  { %178 = vmax.xlane.f32.xlu1 %v177_v30 }
 0x23c   :  { %v171_v31 = vpop.permute.xlu1 %170 }
 0x23d   :  { %v175_v32 = vsel %vm165_vm5, %v171_v31, -9e+15 }
 0x23e   :  { %v180_v33 = vsel %vm176_vm4, %v175_v32, -inf }
 0x23f   :  { %181 = vmax.xlane.f32.xlu0 %v180_v33 }
 0x2c4   :  { %v179_v34 = vpop.xlane.xlu1 %178 }
 0x2c5   :  { %v183_v35 = vsub.f32 %v174_v29, %v179_v34 }
 0x2c7   :  { %v185_v36 = vmul.f32 1.442695, %v183_v35 }
 0x2c8   :  { %v182_v37 = vpop.xlane.xlu0 %181 }
 0x2c9   :  { %953 = vpow2.f32 %v185_v36  ;;  %v184_v38 = vsub.f32 %v175_v32, %v182_v37 }
 0x2cb   :  { %v187_v39 = vmul.f32 1.442695, %v184_v38 }
 0x2cd   :  { %955 = vpow2.f32 %v187_v39 }
 0x2d6   :  { %v954_v40 = vpop.eup %953 }
 0x2d7   :  { %191 = vrot.lane.b32.xlu1 %v954_v40, %s997_s20 }
 0x2da   :  { %v956_v41 = vpop.eup %955 }
 0x2db   :  { %193 = vrot.lane.b32.xlu1 %v956_v41, %s997_s20 }
 0x349   :  { %v192_v42 = vpop.permute.xlu1 %191 }
 0x34a   :  { %v198_v43 = vsel %vm197_vm6, %v192_v42, 0.0 }
 0x34b   :  { %199 = vadd.xlane.f32.xlu1 %v198_v43 }
 0x34d   :  { %v194_v44 = vpop.permute.xlu1 %193 }
 0x34e   :  { %v201_v45 = vsel %vm197_vm6, %v194_v44, 0.0 }
 0x34f   :  { %202 = vadd.xlane.f32.xlu0 %v201_v45 }
 0x3d4   :  { %v200_v46 = vpop.xlane.xlu1 %199 }
 0x3d5   :  { %957 = vrcp.f32 %v200_v46 }
 0x3d8   :  { %v203_v47 = vpop.xlane.xlu0 %202 }
 0x3d9   :  { %959 = vrcp.f32 %v203_v47 }
 0x3e2   :  { %v958_v48 = vpop.eup %957 }
 0x3e3   :  { %v206_v49 = vmul.f32 %v958_v48, %v954_v40 }
 0x3e5   :  { %210 = vrot.lane.b32.xlu0 %v206_v49, %s997_s20 }
 0x3e6   :  { %v960_v50 = vpop.eup %959 }
 0x3e7   :  { %v207_v51 = vmul.f32 %v960_v50, %v956_v41 }
 0x3e9   :  { %212 = vrot.lane.b32.xlu1 %v207_v51, %s997_s20  ;;  %305 = vrot.lane.b32.xlu0 %v1036_v5, %s998_s21 }
 0x3ed   :  { %303 = vrot.lane.b32.xlu0 %v1023_v2, %s998_s21 }
 0x457   :  { %v211_v52 = vpop.permute.xlu0 %210 }
 0x458   :  { %909 = vmatprep.mubr.msk.f32.mxu1 %vm197_vm6, %v211_v52 }
 0x45b   :  { %v213_v53 = vpop.permute.xlu1 %212  ;;  %v306_v54 = vpop.permute.xlu0 %305 }
 0x45c   :  { %910 = vmatmul.mubr.msk.f32.vlgmr.msra.gmra.mxu1 %vm197_vm6, %v213_v53  ;;  %912 = vmatprep.subr.mxu1 %v306_v54 }
 0x45d   :  { %913 = vmatpush3.msra.mxu1 %v306_v54 }
 0x45f   :  { %v304_v55 = vpop.permute.xlu0 %303 }
 0x460   :  { %914 = vmatprep.subr.mxu1 %v304_v55 }
 0x461   :  { %915 = vmatpush3.msra.mxu1 %v304_v55 }
 0x51c   :  { %v911_v56 = vpop.f32.mrf.mxu1 }
 0x51d   :  { %v297_v57 = vmul.f32 1.442695, %v911_v56  ;;  %vm294_vm8 = vcmp.gt.f32.partialorder %v911_v56, 0.0 }
 0x51e   :  { %v284_v58 = vpop.f32.mrf.mxu1 }
 0x51f   :  { %961 = vpow2.f32 %v297_v57  ;;  %v295_v59 = vmul.f32 1.442695, %v284_v58  ;;  %vm293_vm7 = vcmp.gt.f32.partialorder %v284_v58, 0.0 }
 0x521   :  { %963 = vpow2.f32 %v295_v59 }
 0x52c   :  { %v962_v60 = vpop.eup %961 }
 0x52d   :  { %v856_v62 = vadd.f32 -1.0, %v962_v60 }
 0x52e   :  { %v964_v61 = vpop.eup %963 }
 0x52f   :  { %v855_v63 = vadd.f32 -1.0, %v964_v61  ;;  %v302_v1 = vsel %vm294_vm8, %v911_v56, %v856_v62 }
 0x531   :  { %v301_v0 = vsel %vm293_vm7, %v284_v58, %v855_v63 }
 0x532   :  { %916 = vmatprep.mubr.msk.f32.mxu1 %vm197_vm6, %v301_v0 }
 0x533   :  { %917 = vmatmul.mubr.msk.f32.vlgmr.msra.gmra.mxu1 %vm197_vm6, %v302_v1 }
 0x5f3   :  { %v918_v4 = vpop.f32.mrf.mxu1 }
 0x5f4   :  { %919 = vmatprep.subr.mxu0 %v918_v4 }
 0x5f5   :  { %v381_v6 = vpop.f32.mrf.mxu1  ;;  %920 = vmatpush3.msra.mxu0 %v918_v4 }
 0x5f6   :  { %431 = vperm.xlu1 %952, %v381_v6   ;;  %392 = vrot.lane.b32.xlu0 %v381_v6, %s1000_s22 }
 0x5f7   :  { %921 = vmatprep.subr.mxu0 %v381_v6 }
 0x5f8   :  { %922 = vmatpush3.msra.mxu0 %v381_v6 }
 0x5fa   :  { %394 = vrot.lane.b32.xlu0 %v918_v4, %s1000_s22 }
 0x5fe   :  { %435 = vperm.xlu0 %951, %v918_v4  }
 0x668   :  { %v393_v7 = vpop.permute.xlu0 %392 }
 0x669   :  { %398 = vxpose.xlu1.b32.start [1/2] (short) (narrow) %v393_v7, 8 }
 0x66c   :  { %v395_v8 = vpop.permute.xlu0 %394 }
 0x66d   :  { %399 = vxpose.xlu1.b32.end [2/2] (short) (narrow) %v395_v8, 8 }
 0x671   :  { %v432_v9 = vpop.permute.xlu1 %431 }
 0x679   :  { %v436_v12 = vpop.permute.xlu0 %435 }
 0x6e5   :  { %v414_v10 = vpop.trf.xlu1 }
 0x6e6   :  { %v441_v11 = vrot.slane %v414_v10, %v146_v15 }
 0x6e8   :  { %v442_v16 = vadd.f32 %v441_v11, %v432_v9  ;;  %v443_v17 = vadd.f32 %v441_v11, %v436_v12 }
 0x6ea   :  { %v444_v18 = vmul.f32 %v442_v16, %v1046_v14  ;;  %v445_v20 = vmul.f32 %v443_v17, %v1051_v19 }
 0x6ec   :  { %vm446_vm9 = vcmp.gt.f32.partialorder %v444_v18, 0.0  ;;  %v448_v21 = vmul.f32 0.2, %v444_v18  ;;  %v449_v23 = vmul.f32 0.2, %v445_v20  ;;  %vm447_vm10 = vcmp.gt.f32.partialorder %v445_v20, 0.0 }
 0x6ee   :  { %v450_v22 = vsel %vm446_vm9, %v444_v18, %v448_v21  ;;  %v451_v24 = vsel %vm447_vm10, %v445_v20, %v449_v23  ;;  %v699_v18 = vmul.f32 %v1023_v2, %v1023_v2 }
 0x6ef   :  { %454 = vrot.lane.b32.xlu0 %v450_v22, %s996_s19 }
 0x6f0   :  { %v701_v20 = vsel %vm700_vm14, %v699_v18, 0.0 }
 0x6f1   :  { %v702_v21 = vrot.slane %v701_v20, 4 }
 0x6f3   :  { %456 = vrot.lane.b32.xlu0 %v451_v24, %s996_s19  ;;  %v703_v22 = vadd.f32 %v702_v21, %v701_v20 }
 0x6f5   :  { %v704_v23 = vrot.slane %v703_v22, 2 }
 0x6f7   :  { %v705_v24 = vadd.f32 %v704_v23, %v703_v22 }
 0x761   :  { %v455_v25 = vpop.permute.xlu0 %454 }
 0x762   :  { %v460_v13 = vsel %vm164_vm3, %v455_v25, -9e+15  ;;  %v706_v25 = vrot.slane %v705_v24, 1 }
 0x763   :  { %v462_v15 = vsel %vm176_vm4, %v460_v13, -inf }
 0x764   :  { %463 = vmax.xlane.f32.xlu0 %v462_v15  ;;  %v707_v15 = vadd.f32 %v706_v25, %v705_v24 }
 0x765   :  { %v457_v14 = vpop.permute.xlu0 %456 }
 0x766   :  { %v461_v19 = vsel %vm165_vm5, %v457_v14, -9e+15 }
 0x767   :  { %v465_v26 = vsel %vm176_vm4, %v461_v19, -inf }
 0x768   :  { %466 = vmax.xlane.f32.xlu1 %v465_v26 }
 0x7ed   :  { %v464_v27 = vpop.xlane.xlu0 %463 }
 0x7ee   :  { %v468_v28 = vsub.f32 %v460_v13, %v464_v27 }
 0x7f0   :  { %v470_v29 = vmul.f32 1.442695, %v468_v28 }
 0x7f1   :  { %v467_v30 = vpop.xlane.xlu1 %466 }
 0x7f2   :  { %965 = vpow2.f32 %v470_v29  ;;  %v469_v31 = vsub.f32 %v461_v19, %v467_v30 }
 0x7f4   :  { %v472_v32 = vmul.f32 1.442695, %v469_v31 }
 0x7f6   :  { %967 = vpow2.f32 %v472_v32 }
 0x7ff   :  { %v966_v33 = vpop.eup %965 }
 0x800   :  { %476 = vrot.lane.b32.xlu0 %v966_v33, %s997_s20 }
 0x803   :  { %v968_v34 = vpop.eup %967 }
 0x804   :  { %478 = vrot.lane.b32.xlu0 %v968_v34, %s997_s20 }
 0x872   :  { %v477_v35 = vpop.permute.xlu0 %476 }
 0x873   :  { %v482_v5 = vsel %vm197_vm6, %v477_v35, 0.0 }
 0x874   :  { %483 = vadd.xlane.f32.xlu0 %v482_v5 }
 0x876   :  { %v479_v36 = vpop.permute.xlu0 %478 }
 0x877   :  { %v485_v37 = vsel %vm197_vm6, %v479_v36, 0.0 }
 0x878   :  { %486 = vadd.xlane.f32.xlu1 %v485_v37 }
 0x8fd   :  { %v484_v38 = vpop.xlane.xlu0 %483 }
 0x8fe   :  { %969 = vrcp.f32 %v484_v38 }
 0x901   :  { %v487_v39 = vpop.xlane.xlu1 %486 }
 0x902   :  { %971 = vrcp.f32 %v487_v39 }
 0x90b   :  { %v970_v40 = vpop.eup %969 }
 0x90c   :  { %v490_v41 = vmul.f32 %v970_v40, %v966_v33 }
 0x90e   :  { %494 = vrot.lane.b32.xlu1 %v490_v41, %s997_s20 }
 0x90f   :  { %v972_v42 = vpop.eup %971 }
 0x910   :  { %v491_v43 = vmul.f32 %v972_v42, %v968_v34 }
 0x912   :  { %496 = vrot.lane.b32.xlu0 %v491_v43, %s997_s20 }
 0x980   :  { %v495_v44 = vpop.permute.xlu1 %494 }
 0x981   :  { %923 = vmatprep.mubr.msk.f32.mxu0 %vm197_vm6, %v495_v44 }
 0x984   :  { %v497_v45 = vpop.permute.xlu0 %496 }
 0x985   :  { %924 = vmatmul.mubr.msk.f32.vlgmr.msra.gmra.mxu0 %vm197_vm6, %v497_v45 }
 0xa45   :  { %v925_v46 = vpop.f32.mrf.mxu0 }
 0xa46   :  { %v581_v47 = vmul.f32 1.442695, %v925_v46  ;;  %vm578_vm11 = vcmp.gt.f32.partialorder %v925_v46, 0.0 }
 0xa47   :  { %v568_v48 = vpop.f32.mrf.mxu0 }
 0xa48   :  { %973 = vpow2.f32 %v581_v47  ;;  %v579_v49 = vmul.f32 1.442695, %v568_v48  ;;  %vm577_vm13 = vcmp.gt.f32.partialorder %v568_v48, 0.0 }
 0xa4a   :  { %975 = vpow2.f32 %v579_v49 }
 0xa55   :  { %v974_v50 = vpop.eup %973 }
 0xa56   :  { %v862_v51 = vadd.f32 -1.0, %v974_v50 }
 0xa57   :  { %v976_v52 = vpop.eup %975 }
 0xa58   :  { %v861_v53 = vadd.f32 -1.0, %v976_v52  ;;  %v586_v54 = vsel %vm578_vm11, %v925_v46, %v862_v51 }
 0xa59   :  { %v588_v55 = vmul.f32 %v586_v54, %v586_v54 }
 0xa5a   :  { %v585_v56 = vsel %vm577_vm13, %v568_v48, %v861_v53 }
 0xa5b   :  { %v593_v57 = vsel %vm589_vm12, %v588_v55, 0.0  ;;  %v587_v58 = vmul.f32 %v585_v56, %v585_v56 }
 0xa5c   :  { %594 = vadd.xlane.f32.xlu0 %v593_v57 }
 0xa5d   :  { %v590_v59 = vsel %vm589_vm12, %v587_v58, 0.0 }
 0xa5e   :  { %591 = vadd.xlane.f32.xlu1 %v590_v59 }
 0xa6f   :  { %708 = vrot.lane.b32.xlu1 %v1023_v2, %s1001_s23 }
 0xae5   :  { %v595_v60 = vpop.xlane.xlu0 %594 }
 0xae6   :  { %v597_v61 = vmax.f32 %v595_v60, 1e-24 }
 0xae7   :  { %v592_v62 = vpop.xlane.xlu1 %591 }
 0xae8   :  { %977 = vrsqrt.f32 %v597_v61  ;;  %v596_v63 = vmax.f32 %v592_v62, 1e-24 }
 0xaea   :  { %979 = vrsqrt.f32 %v596_v63 }
 0xaeb   :  { %v709_v0 = vpop.permute.xlu1 %708 }
 0xaec   :  { %933 = vmatprep.subr.mxu0 %v709_v0 }
 0xaed   :  { %934 = vmatpush3.msra.mxu0 %v709_v0 }
 0xaf5   :  { %v978_v1 = vpop.eup %977 }
 0xaf6   :  { %v601_v3 = vmul.f32 %v978_v1, %v586_v54 }
 0xaf7   :  { %v980_v4 = vpop.eup %979 }
 0xaf8   :  { %v600_v6 = vmul.f32 %v980_v4, %v585_v56  ;;  %926 = vmatprep.subr.msk.mxu1 %vm589_vm12, %v601_v3  ;;  %v692_v7 = vmul.f32 %v601_v3, %v601_v3 }
 0xaf9   :  { %927 = vmatpush3.xpose.msk.msra.mxu1 %vm589_vm12, %v601_v3 }
 0xafa   :  { %928 = vmatprep.subr.msk.mxu1 %vm589_vm12, %v600_v6  ;;  %930 = vmatprep.mubr.msk.f32.mxu1 %vm589_vm12, %v600_v6  ;;  %v696_v8 = vsel %vm589_vm12, %v692_v7, 0.0  ;;  %v691_v9 = vmul.f32 %v600_v6, %v600_v6 }
 0xafb   :  { %935 = vmatprep.mubr.msk.f32.mxu0 %vm589_vm12, %v600_v6  ;;  %697 = vadd.xlane.f32.xlu1 %v696_v8 }
 0xafc   :  { %936 = vmatmul.mubr.msk.f32.vlgmr.msra.gmra.mxu0 %vm589_vm12, %v601_v3  ;;  %v693_v10 = vsel %vm589_vm12, %v691_v9, 0.0 }
 0xafd   :  { %694 = vadd.xlane.f32.xlu0 %v693_v10  ;;  %929 = vmatpush3.xpose.msk.msra.mxu1 %vm589_vm12, %v600_v6 }
 0xb00   :  { %931 = vmatmul.mubr.msk.f32.vlgmr.msra.gmra.mxu1 %vm589_vm12, %v601_v3 }
 0xb84   :  { %v698_v19 = vpop.xlane.xlu1 %697 }
 0xb85   :  { %v787_v28 = vadd.f32 %v707_v15, %v698_v19 }
 0xb86   :  { %v695_v13 = vpop.xlane.xlu0 %694 }
 0xb87   :  { %v786_v14 = vadd.f32 %v707_v15, %v695_v13 }
 0xbbc   :  { %v937_v11 = vpop.f32.mrf.mxu0 }
 0xbbd   :  { %v789_v17 = vmul.f32 2.0, %v937_v11 }
 0xbbe   :  { %v777_v12 = vpop.f32.mrf.mxu0 }
 0xbbf   :  { %v788_v16 = vmul.f32 2.0, %v777_v12 }
 0xbc0   :  { %v932_v43 = vpop.f32.mrf.mxu1 }
 0xbc1   :  { %792 = vrot.lane.b32.xlu0 %v788_v16, %s995_s0  ;;  %v684_v46 = vmul.f32 0.5, %v932_v43 }
 0xbc2   :  { %v674_v44 = vpop.f32.mrf.mxu1 }
 0xbc3   :  { %v683_v45 = vmul.f32 0.5, %v674_v44 }
 0xbc5   :  { %794 = vrot.lane.b32.xlu0 %v789_v17, %s995_s0 }
 0xc33   :  { %v793_v26 = vpop.permute.xlu0 %792 }
 0xc34   :  { %v798_v27 = vsub.f32 %v786_v14, %v793_v26 }
 0xc36   :  { %v800_v29 = vadd.f32 1.0, %v798_v27 }
 0xc37   :  { %v795_v30 = vpop.permute.xlu0 %794 }
 0xc38   :  { %981 = vrcp.f32 %v800_v29  ;;  %v799_v31 = vsub.f32 %v787_v28, %v795_v30 }
 0xc3a   :  { %v801_v32 = vadd.f32 1.0, %v799_v31 }
 0xc3c   :  { %983 = vrcp.f32 %v801_v32 }
 0xc45   :  { %v982_v2 = vpop.eup %981 }
 0xc46   :  { %806 = vrot.lane.b32.xlu0 %v982_v2, %s1001_s23 }
 0xc49   :  { %v984_v33 = vpop.eup %983 }
 0xc4a   :  { %808 = vrot.lane.b32.xlu0 %v984_v33, %s1001_s23 }
 0xcb8   :  { %v807_v34 = vpop.permute.xlu0 %806 }
 0xcb9   :  { %v813_v35 = vsel %vm812_vm15, %v807_v34, 0.0 }
 0xcba   :  { %814 = vadd.xlane.f32.xlu0 %v813_v35 }
 0xcbc   :  { %v809_v5 = vpop.permute.xlu0 %808 }
 0xcbd   :  { %v816_v36 = vsel %vm812_vm15, %v809_v5, 0.0 }
 0xcbe   :  { %817 = vadd.xlane.f32.xlu1 %v816_v36 }
 0xccf   :  { %823 = vrot.lane.b32.xlu1 %v600_v6, %s1002_s24 }
 0xcd3   :  { %825 = vrot.lane.b32.xlu1 %v601_v3, %s1002_s24 }
 0xd43   :  { %v815_v37 = vpop.xlane.xlu0 %814 }
 0xd44   :  { %985 = vrcp.f32 %v815_v37 }
 0xd47   :  { %v818_v38 = vpop.xlane.xlu1 %817 }
 0xd48   :  { %987 = vrcp.f32 %v818_v38 }
 0xd49   :  { %989 = vtanh.f32 %v683_v45 }
 0xd4a   :  { %991 = vtanh.f32 %v684_v46 }
 0xd4b   :  { %v824_v47 = vpop.permute.xlu1 %823 }
 0xd4f   :  { %v826_v51 = vpop.permute.xlu1 %825 }
 0xd51   :  { %v986_v39 = vpop.eup %985 }
 0xd52   :  { %v820_v40 = vmul.f32 %v986_v39, %v982_v2 }
 0xd54   :  { %831 = vrot.lane.b32.xlu1 %v820_v40, %s1003_s25 }
 0xd55   :  { %v988_v41 = vpop.eup %987 }
 0xd56   :  { %v822_v42 = vmul.f32 %v988_v41, %v984_v33  ;;  %v990_v48 = vpop.eup %989 }
 0xd57   :  { %v687_v49 = vmul.f32 0.5, %v990_v48  ;;  %v992_v50 = vpop.eup %991 }
 0xd58   :  { %833 = vrot.lane.b32.xlu1 %v822_v42, %s1003_s25  ;;  %v688_v52 = vmul.f32 0.5, %v992_v50 }
 0xd59   :  { %v689_v53 = vadd.f32 0.5, %v687_v49 }
 0xd5a   :  { %v690_v57 = vadd.f32 0.5, %v688_v52 }
 0xd5b   :  { %v837_v54 = vsel %vm197_vm6, %v689_v53, %v824_v47 }
 0xd5c   :  { %v838_v59 = vsel %vm197_vm6, %v690_v57, %v826_v51 }
 0xdc6   :  { %v832_v55 = vpop.permute.xlu1 %831 }
 0xdc7   :  { %v840_v56 = vsel %vm839_vm0, %v837_v54, %v832_v55 }
 0xdc8   :  { %v843_v58 = vsel %vm842_vm1, %v840_v56, 0.0 }
 0xdc9   :  { %845 = vst [vmem:[%s1126_s1] sm:$0xff] %v843_v58 }
 0xdca   :  { %v834_v60 = vpop.permute.xlu1 %833 }
 0xdcb   :  { %v841_v61 = vsel %vm839_vm0, %v838_v59, %v834_v60 }
 0xdcc   :  { %v844_v62 = vsel %vm842_vm1, %v841_v61, 0.0 }
 0xdcd   :  { %846 = vst [vmem:[%s1126_s1 + $0x8] sm:$0xff] %v844_v62 }

</bundles_post_ra>
